<compile_context>
chip_gen: v7x
topology: tpu7x:2x2x1
jax: 0.10.0
libtpu: 0.0.40
codegen_flags: <defaults>
</compile_context>

<pallas_src>
import numpy as np
import jax
import jax.numpy as jnp
from jax.experimental import pallas as pl
from jax.experimental.pallas import tpu as pltpu

FILT_SIZE = 4   # module default
STRIDE = 2      # module default


def _filter_1d(filt_size):
    table = {
        1: [1.0],
        2: [1.0, 1.0],
        3: [1.0, 2.0, 1.0],
        4: [1.0, 3.0, 3.0, 1.0],
        5: [1.0, 4.0, 6.0, 4.0, 1.0],
        6: [1.0, 5.0, 10.0, 10.0, 5.0, 1.0],
        7: [1.0, 6.0, 15.0, 20.0, 15.0, 6.0, 1.0],
    }
    return np.array(table[filt_size], dtype=np.float64)


def _upsample_matrix(n):
    """(2n, n) matrix U of the 1-D op: repl-pad(1) -> conv_transpose(stride=2,
    taps a/sum(a)*stride) -> crop, i.e. out_1d = U @ v.  (filt_size=4, stride=2)

    Derivation (identical to the verified shift/scale kernel):
      out[2m]   = b3 * v[max(m-1, 0)] + b1 * v[m]
      out[2m+1] = b2 * v[m]           + b0 * v[min(m+1, n-1)]
    with b = [0.25, 0.75, 0.75, 0.25].
    """
    a = _filter_1d(FILT_SIZE)
    b0, b1, b2, b3 = (a / a.sum() * STRIDE).tolist()
    u = np.zeros((2 * n, n), dtype=np.float64)
    for m in range(n):
        u[2 * m, max(m - 1, 0)] += b3
        u[2 * m, m] += b1
        u[2 * m + 1, m] += b2
        u[2 * m + 1, min(m + 1, n - 1)] += b0
    return u


def upsample_kernel(x_ref, colmat_ref, rowmat_ref, o_ref):
    """x_ref: (G, H, W) input block.  colmat_ref: (W, 2W).  rowmat_ref: (2H, H).
    o_ref: (G, 2H, 2W) -- the final, fully interleaved output tile."""
    cm = colmat_ref[...]                       # (W, 2W), resident across grid
    rm = rowmat_ref[...]                       # (2H, H), resident across grid
    g_blk = x_ref.shape[0]
    for g in range(g_blk):                     # static unroll; G is kept small
        xg = x_ref[g]                          # (H, W)
        if xg.dtype != jnp.float32:
            xg = xg.astype(jnp.float32)
        # column pass: repl-pad + taps + stride-2 interleave folded into cm
        t = jnp.dot(xg, cm, preferred_element_type=jnp.float32,
                    precision=jax.lax.Precision.HIGHEST)         # (H, 2W)
        # row pass: same, folded into rm
        y = jnp.dot(rm, t, preferred_element_type=jnp.float32,
                    precision=jax.lax.Precision.HIGHEST)         # (2H, 2W)
        o_ref[g] = y.astype(o_ref.dtype)


def _pick_block_channels(nc, h, w, itemsize):
    """Largest divisor of nc whose in+out block fits a conservative VMEM budget
    (the pipeline double-buffers both), preferring >=2 grid steps so the
    'parallel' grid axis can shard across TensorCores (v7x) / megacore."""
    bytes_per_chan = (h * w + 4 * h * w) * max(int(itemsize), 4)
    budget = 6 * 1024 * 1024        # per-copy budget; ~4x this is live in VMEM
    cap = max(1, min(nc, budget // max(bytes_per_chan, 1), 16))
    g = 1
    for d in range(1, cap + 1):
        if nc % d == 0:
            g = d
    if nc // g < 2:                 # keep at least 2 parallel grid steps if possible
        for d in range(g - 1, 0, -1):
            if nc % d == 0 and nc // d >= 2:
                g = d
                break
    return g


def upsample(x, *, block_channels=None):
    """x: (N, C, H, W) -> (N, C, 2H, 2W), matching Upsample(channels=C).forward."""
    n, c, h, w = x.shape
    nc = n * c
    itemsize = jnp.dtype(x.dtype).itemsize
    g = block_channels or _pick_block_channels(nc, h, w, itemsize)
    assert nc % g == 0, "block_channels must divide N*C"

    xf = x.reshape(nc, h, w)                                          # free reshape
    colmat = jnp.asarray(_upsample_matrix(w).T, dtype=jnp.float32)    # (W, 2W)
    rowmat = jnp.asarray(_upsample_matrix(h), dtype=jnp.float32)      # (2H, H)

    cost = pl.CostEstimate(
        flops=int(nc * (2 * h * w * (2 * w) + 2 * (2 * h) * h * (2 * w))),
        transcendentals=0,
        bytes_accessed=int(nc * h * w * itemsize                      # input
                           + nc * 4 * h * w * itemsize                # output
                           + (w * 2 * w + 2 * h * h) * 4),            # matrices
    )

    out = pl.pallas_call(
        upsample_kernel,
        out_shape=jax.ShapeDtypeStruct((nc, 2 * h, 2 * w), x.dtype),
        grid=(nc // g,),
        in_specs=[
            pl.BlockSpec((g, h, w), lambda i: (i, 0, 0)),
            pl.BlockSpec((w, 2 * w), lambda i: (0, 0)),   # constant block index ->
            pl.BlockSpec((2 * h, h), lambda i: (0, 0)),   #   fetched once, stays resident
        ],
        out_specs=pl.BlockSpec((g, 2 * h, 2 * w), lambda i: (i, 0, 0)),
        compiler_params=pltpu.CompilerParams(dimension_semantics=("parallel",)),
        cost_estimate=cost,
    )(xf, colmat, rowmat)

    return out.reshape(n, c, 2 * h, 2 * w)                            # free reshape


def reference_upsample(x_np, filt_size=FILT_SIZE, stride=STRIDE):
    """Direct (loopy) NumPy transcription of the PyTorch forward semantics."""
    a = _filter_1d(filt_size)
    filt2 = np.outer(a, a)
    filt2 = filt2 / filt2.sum() * stride ** 2
    pad_size = (filt_size - 1) // 2
    p = 1 + pad_size
    N, C, H, W = x_np.shape
    xp = np.pad(x_np.astype(np.float64), ((0, 0), (0, 0), (1, 1), (1, 1)), mode="edge")
    Hp, Wp = H + 2, W + 2
    OH = (Hp - 1) * stride - 2 * p + filt_size
    OW = (Wp - 1) * stride - 2 * p + filt_size
    out = np.zeros((N, C, OH, OW), dtype=np.float64)
    for i in range(Hp):
        for j in range(Wp):
            for ky in range(filt_size):
                for kx in range(filt_size):
                    y = i * stride - p + ky
                    xx = j * stride - p + kx
                    if 0 <= y < OH and 0 <= xx < OW:
                        out[:, :, y, xx] += xp[:, :, i, j] * filt2[ky, kx]
    ret = out[:, :, 1:, 1:]
    if filt_size % 2 == 0:
        ret = ret[:, :, :-1, :-1]
    return ret


if __name__ == "__main__":
    key = jax.random.PRNGKey(0)
    N, C, H, W = 2, 4, 16, 16
    x = jax.random.normal(key, (N, C, H, W), dtype=jnp.float32)

    y = jax.block_until_ready(jax.jit(upsample)(x))

    assert y.shape == (N, C, 2 * H, 2 * W), y.shape
    ref = reference_upsample(np.asarray(x))
    # MXU f32 (precision=HIGHEST) is f32-faithful; small margin over the f64 reference.
    np.testing.assert_allclose(np.asarray(y), ref, rtol=1e-4, atol=1e-4)
    print("KERNEL_OK")
</pallas_src>

<mosaic_0001>
module attributes {stable_mosaic.version = 11 : i64} {
  func.func @upsample_kernel(%arg0: i32, %arg1: memref<4x16x16xf32, #tpu.memory_space<vmem>>, %arg2: memref<16x32xf32, #tpu.memory_space<vmem>>, %arg3: memref<32x16xf32, #tpu.memory_space<vmem>>, %arg4: memref<4x32x32xf32, #tpu.memory_space<vmem>>) attributes {dimension_semantics = [#tpu.dimension_semantics<parallel>], iteration_bounds = array<i64: 2>, scalar_prefetch = 0 : i64, scratch_operands = 0 : i64, tpu.core_type = #tpu.core_type<tc>, window_params = [{transform_indices = @transform_0, window_bounds = array<i64: 4, 16, 16>}, {pipeline_mode = #tpu.pipeline_mode<synchronous>, transform_indices = @transform_1, window_bounds = array<i64: 16, 32>}, {pipeline_mode = #tpu.pipeline_mode<synchronous>, transform_indices = @transform_2, window_bounds = array<i64: 32, 16>}, {transform_indices = @transform_3, window_bounds = array<i64: 4, 32, 32>}]} {
    %c0 = arith.constant 0 : index
    %c0_0 = arith.constant 0 : index
    %0 = vector.load %arg2[%c0, %c0_0] : memref<16x32xf32, #tpu.memory_space<vmem>>, vector<16x32xf32>
    %c0_1 = arith.constant 0 : index
    %c0_2 = arith.constant 0 : index
    %1 = vector.load %arg3[%c0_1, %c0_2] : memref<32x16xf32, #tpu.memory_space<vmem>>, vector<32x16xf32>
    %c0_3 = arith.constant 0 : index
    %c0_4 = arith.constant 0 : index
    %c0_5 = arith.constant 0 : index
    %2 = vector.load %arg1[%c0_3, %c0_4, %c0_5] : memref<4x16x16xf32, #tpu.memory_space<vmem>>, vector<1x16x16xf32>
    %3 = vector.shape_cast %2 : vector<1x16x16xf32> to vector<16x16xf32>
    %cst = arith.constant dense<0.000000e+00> : vector<16x32xf32>
    %4 = tpu.matmul %3, %0, %cst {dimension_numbers = #tpu.dot_dimension_numbers<[1], [0], [0], [1], [0, 0, 1, 1], [], []>, precision = #tpu.contract_precision<fp32>} : vector<16x16xf32>, vector<16x32xf32>, vector<16x32xf32> -> vector<16x32xf32>
    %cst_6 = arith.constant dense<0.000000e+00> : vector<32x32xf32>
    %5 = tpu.matmul %1, %4, %cst_6 {dimension_numbers = #tpu.dot_dimension_numbers<[1], [0], [0], [1], [0, 0, 1, 1], [], []>, precision = #tpu.contract_precision<fp32>} : vector<32x16xf32>, vector<16x32xf32>, vector<32x32xf32> -> vector<32x32xf32>
    %c0_7 = arith.constant 0 : index
    %c0_8 = arith.constant 0 : index
    %c0_9 = arith.constant 0 : index
    %6 = vector.load %arg4[%c0_7, %c0_8, %c0_9] : memref<4x32x32xf32, #tpu.memory_space<vmem>>, vector<1x32x32xf32>
    %7 = vector.shape_cast %6 : vector<1x32x32xf32> to vector<32x32xf32>
    %8 = vector.shape_cast %5 : vector<32x32xf32> to vector<1x32x32xf32>
    tpu.vector_store %arg4[%c0_7, %c0_8, %c0_9], %8 {strides = array<i32>} : memref<4x32x32xf32, #tpu.memory_space<vmem>>, vector<1x32x32xf32>,
    %c1 = arith.constant 1 : index
    %c0_10 = arith.constant 0 : index
    %c0_11 = arith.constant 0 : index
    %9 = vector.load %arg1[%c1, %c0_10, %c0_11] : memref<4x16x16xf32, #tpu.memory_space<vmem>>, vector<1x16x16xf32>
    %10 = vector.shape_cast %9 : vector<1x16x16xf32> to vector<16x16xf32>
    %cst_12 = arith.constant dense<0.000000e+00> : vector<16x32xf32>
    %11 = tpu.matmul %10, %0, %cst_12 {dimension_numbers = #tpu.dot_dimension_numbers<[1], [0], [0], [1], [0, 0, 1, 1], [], []>, precision = #tpu.contract_precision<fp32>} : vector<16x16xf32>, vector<16x32xf32>, vector<16x32xf32> -> vector<16x32xf32>
    %cst_13 = arith.constant dense<0.000000e+00> : vector<32x32xf32>
    %12 = tpu.matmul %1, %11, %cst_13 {dimension_numbers = #tpu.dot_dimension_numbers<[1], [0], [0], [1], [0, 0, 1, 1], [], []>, precision = #tpu.contract_precision<fp32>} : vector<32x16xf32>, vector<16x32xf32>, vector<32x32xf32> -> vector<32x32xf32>
    %c1_14 = arith.constant 1 : index
    %c0_15 = arith.constant 0 : index
    %c0_16 = arith.constant 0 : index
    %13 = vector.load %arg4[%c1_14, %c0_15, %c0_16] : memref<4x32x32xf32, #tpu.memory_space<vmem>>, vector<1x32x32xf32>
    %14 = vector.shape_cast %13 : vector<1x32x32xf32> to vector<32x32xf32>
    %15 = vector.shape_cast %12 : vector<32x32xf32> to vector<1x32x32xf32>
    tpu.vector_store %arg4[%c1_14, %c0_15, %c0_16], %15 {strides = array<i32>} : memref<4x32x32xf32, #tpu.memory_space<vmem>>, vector<1x32x32xf32>,
    %c2 = arith.constant 2 : index
    %c0_17 = arith.constant 0 : index
    %c0_18 = arith.constant 0 : index
    %16 = vector.load %arg1[%c2, %c0_17, %c0_18] : memref<4x16x16xf32, #tpu.memory_space<vmem>>, vector<1x16x16xf32>
    %17 = vector.shape_cast %16 : vector<1x16x16xf32> to vector<16x16xf32>
    %cst_19 = arith.constant dense<0.000000e+00> : vector<16x32xf32>
    %18 = tpu.matmul %17, %0, %cst_19 {dimension_numbers = #tpu.dot_dimension_numbers<[1], [0], [0], [1], [0, 0, 1, 1], [], []>, precision = #tpu.contract_precision<fp32>} : vector<16x16xf32>, vector<16x32xf32>, vector<16x32xf32> -> vector<16x32xf32>
    %cst_20 = arith.constant dense<0.000000e+00> : vector<32x32xf32>
    %19 = tpu.matmul %1, %18, %cst_20 {dimension_numbers = #tpu.dot_dimension_numbers<[1], [0], [0], [1], [0, 0, 1, 1], [], []>, precision = #tpu.contract_precision<fp32>} : vector<32x16xf32>, vector<16x32xf32>, vector<32x32xf32> -> vector<32x32xf32>
    %c2_21 = arith.constant 2 : index
    %c0_22 = arith.constant 0 : index
    %c0_23 = arith.constant 0 : index
    %20 = vector.load %arg4[%c2_21, %c0_22, %c0_23] : memref<4x32x32xf32, #tpu.memory_space<vmem>>, vector<1x32x32xf32>
    %21 = vector.shape_cast %20 : vector<1x32x32xf32> to vector<32x32xf32>
    %22 = vector.shape_cast %19 : vector<32x32xf32> to vector<1x32x32xf32>
    tpu.vector_store %arg4[%c2_21, %c0_22, %c0_23], %22 {strides = array<i32>} : memref<4x32x32xf32, #tpu.memory_space<vmem>>, vector<1x32x32xf32>,
    %c3 = arith.constant 3 : index
    %c0_24 = arith.constant 0 : index
    %c0_25 = arith.constant 0 : index
    %23 = vector.load %arg1[%c3, %c0_24, %c0_25] : memref<4x16x16xf32, #tpu.memory_space<vmem>>, vector<1x16x16xf32>
    %24 = vector.shape_cast %23 : vector<1x16x16xf32> to vector<16x16xf32>
    %cst_26 = arith.constant dense<0.000000e+00> : vector<16x32xf32>
    %25 = tpu.matmul %24, %0, %cst_26 {dimension_numbers = #tpu.dot_dimension_numbers<[1], [0], [0], [1], [0, 0, 1, 1], [], []>, precision = #tpu.contract_precision<fp32>} : vector<16x16xf32>, vector<16x32xf32>, vector<16x32xf32> -> vector<16x32xf32>
    %cst_27 = arith.constant dense<0.000000e+00> : vector<32x32xf32>
    %26 = tpu.matmul %1, %25, %cst_27 {dimension_numbers = #tpu.dot_dimension_numbers<[1], [0], [0], [1], [0, 0, 1, 1], [], []>, precision = #tpu.contract_precision<fp32>} : vector<32x16xf32>, vector<16x32xf32>, vector<32x32xf32> -> vector<32x32xf32>
    %c3_28 = arith.constant 3 : index
    %c0_29 = arith.constant 0 : index
    %c0_30 = arith.constant 0 : index
    %27 = vector.load %arg4[%c3_28, %c0_29, %c0_30] : memref<4x32x32xf32, #tpu.memory_space<vmem>>, vector<1x32x32xf32>
    %28 = vector.shape_cast %27 : vector<1x32x32xf32> to vector<32x32xf32>
    %29 = vector.shape_cast %26 : vector<32x32xf32> to vector<1x32x32xf32>
    tpu.vector_store %arg4[%c3_28, %c0_29, %c0_30], %29 {strides = array<i32>} : memref<4x32x32xf32, #tpu.memory_space<vmem>>, vector<1x32x32xf32>,
    return
  }
  func.func @transform_0(%arg0: i32) -> (i32, i32, i32) {
    %c0_i32 = arith.constant 0 : i32
    %c0_i32_0 = arith.constant 0 : i32
    %c0_i32_1 = arith.constant 0 : i32
    return %arg0, %c0_i32, %c0_i32_0 : i32, i32, i32
  }
  func.func @transform_1(%arg0: i32) -> (i32, i32) {
    %c0_i32 = arith.constant 0 : i32
    %c0_i32_0 = arith.constant 0 : i32
    %c0_i32_1 = arith.constant 0 : i32
    return %c0_i32, %c0_i32_0 : i32, i32
  }
  func.func @transform_2(%arg0: i32) -> (i32, i32) {
    %c0_i32 = arith.constant 0 : i32
    %c0_i32_0 = arith.constant 0 : i32
    %c0_i32_1 = arith.constant 0 : i32
    return %c0_i32, %c0_i32_0 : i32, i32
  }
  func.func @transform_3(%arg0: i32) -> (i32, i32, i32) {
    %c0_i32 = arith.constant 0 : i32
    %c0_i32_0 = arith.constant 0 : i32
    %c0_i32_1 = arith.constant 0 : i32
    return %arg0, %c0_i32, %c0_i32_0 : i32, i32, i32
  }
}

</mosaic_0001>

<bundles_post_ra>
// kernel: upsample.1
= control target key start
LH: loop header
LB: loop body
LE: loop exit
PB: predicated region body
PF: predicated region fallthrough
CT: control target
= control target key end

     0   :  { %8 = vsyncpa [#allocation3], 0  ;;  %s6562_s0 = inlined_call_operand.hbm [shape: f32[8,16,16], index: 0, kind: input, shape index: {}]   ;;  %s6563_s1 = inlined_call_operand.hbm [shape: f32[16,32], index: 1, kind: input, shape index: {}]   ;;  %s6564_s2 = inlined_call_operand.hbm [shape: f32[32,16], index: 2, kind: input, shape index: {}]   ;;  %s6565_s3 = inlined_call_operand.hbm [shape: f32[8,32,32], index: 3, kind: output, shape index: {}]  }
   0x1   :  { %10 = vsyncpa [#allocation3 + $0x1], 0 }
   0x2   :  { %11 = vsyncpa [#allocation6], 0 }
   0x3   :  { %12 = vsyncpa [#allocation4], 0 }
   0x4   :  { %14 = vsyncpa [#allocation4 + $0x1], 0  ;;  %s6021_s12 = smov 0   ;;  %s6023_s13 = smov 0  }
   0x5   :  { %s6025_s14 = smov 0   ;;  %s6027_s15 = smov 0  }
   0x6 LB: > { %s6042_s16 = sadd.s32 4294967295, %s5991_s15   ;;  %s4762_s17 = sadd.s32 4294967294, %s5991_s15   ;;  %s5991_s15 = sphi %s6027_s15, %s6585_s15   ;;  %s5987_s14 = sphi %s6025_s14, %s6584_s14   ;;  %s5983_s13 = sphi %s6023_s13, %s6583_s13   ;;  %s5979_s12 = sphi %s6021_s12, %s6582_s12  }
   0x7   : > { %p40_p0 = scmp.ne.s32.totalorder %s5983_s13, %s5979_s12  ;;  %p6566_p1 = scmp.eq.s32.totalorder %s6042_s16, 0 }
   0x8   : > { %p112_p3 = scmp.eq.s32.totalorder %s4762_s17, 1  ;;  %p4763_p5 = scmp.ge.s32.totalorder %s5991_s15, 1 }
   0x9   : > { %p6051_p4 = por %p6566_p1, %p40_p0  ;;  %p119_p7 = scmp.lt.s32.totalorder %s5991_s15, 3 }
   0xa   : > { %p6056_p6 = por %p112_p3, %p40_p0  ;;  %s5993_s21 = smov [#allocation5]  }
   0xb   : > { %s6569_s18 = scalar_select %p6051_p4, 1, 0 }
   0xc   : > { %s6570_s19 = scalar_select %p6056_p6, 1, 0 }
   0xd   : > { %p6061_p8 = pnand %p4763_p5, %p119_p7  ;;  %s131_s22 = sshll.u32 %s5993_s21, 4  ;;  %s6065_s22 = int_to_ptr.vmem [resolvable:$true] %s131_s22 }
   0xe   : > { %s5994_s24 = smov [#allocation7]   ;;  %s5835_s28 = scalar_lea.hbm %s6563_s1, 256 }
   0xf   : > { %p5776_p9 = pneg %p6061_p8  ;;  %s144_s25 = sshll.u32 %s5994_s24, 4  ;;  %s6076_s25 = int_to_ptr.vmem [resolvable:$true] %s144_s25 }
  0x10   : > { %p5836_p12 = scmp.ne.s32.totalorder %s6563_s1, %s5835_s28  ;;  %p5842_p5 = scmp.lt.u32.totalorder %s5835_s28, %s6563_s1 }
  0x11   : > { %p6072_p11 = pnand %p5776_p9, %p6566_p1 }
  0x13   : > { %p5837_p13 = pneg %p6072_p11 }
  0x15   : > { %p5838_p0 = pnand %p5837_p13, %p5836_p12 }
  0x17   : > { %p5839_p3 = pneg %p5838_p0 }
  0x19   : > { %p5844_p7 = pnand %p5842_p5, %p5839_p3 }
  0x1b   : > { %5847 = shalt.err (!%p5844_p7)
}
  0x1c   : > { %s5848_s6 = scalar_lea.vmem %s6065_s22, 256  ;;  %p5856_p2 = scmp.lt.s32.totalorder %s6065_s22, %s6065_s22 }
  0x1d   : > { %p5849_p9 = scmp.ne.s32.totalorder %s6065_s22, %s5848_s6  ;;  %p5857_p12 = scmp.lt.s32.totalorder %s5848_s6, %s5848_s6 }
  0x1f   : > { %p5851_p10 = pnand %p5849_p9, %p5837_p13  ;;  %p5858_p0 = por %p5857_p12, %p5856_p2 }
  0x21   : > { %p5852_p1 = pneg %p5851_p10 }
  0x23   : > { %p5859_p6 = pnand %p5858_p0, %p5852_p1 }
  0x25   : > { %5862 = shalt.err (!%p5859_p6)
}
  0x26   : > { %s5995_s7 = smov 128   ;;  %s5996_s8 = smov 8  }
  0x27   : > { %5779 = dma.hbm_to_vmem [thread:$0]  (!%p6072_p11), %s6563_s1, 256, %s6065_s22, [#allocation6], %s5995_s7, %s5995_s7, %s5996_s8  }
  0x28   : > { %s5863_s21 = scalar_lea.hbm %s6564_s2, 512 }
  0x29   : > { %p5864_p1 = scmp.ne.s32.totalorder %s6564_s2, %s5863_s21  ;;  %p5870_p10 = scmp.lt.u32.totalorder %s5863_s21, %s6564_s2 }
  0x2b   : > { %p5866_p2 = pnand %p5864_p1, %p5837_p13 }
  0x2d   : > { %p5867_p6 = pneg %p5866_p2 }
  0x2f   : > { %p5872_p3 = pnand %p5870_p10, %p5867_p6 }
  0x31   : > { %5875 = shalt.err (!%p5872_p3)
}
  0x32   : > { %s5876_s22 = scalar_lea.vmem %s6076_s25, 512  ;;  %p5884_p12 = scmp.lt.s32.totalorder %s6076_s25, %s6076_s25 }
  0x33   : > { %p5877_p5 = scmp.ne.s32.totalorder %s6076_s25, %s5876_s22  ;;  %p5885_p0 = scmp.lt.s32.totalorder %s5876_s22, %s5876_s22 }
  0x35   : > { %p5879_p7 = pnand %p5877_p5, %p5837_p13  ;;  %p5886_p1 = por %p5885_p0, %p5884_p12 }
  0x37   : > { %p5880_p9 = pneg %p5879_p7 }
  0x39   : > { %p5887_p2 = pnand %p5886_p1, %p5880_p9 }
  0x3b   : > { %5890 = shalt.err (!%p5887_p2)
}
  0x3c   : > { %5782 = dma.hbm_to_vmem [thread:$0]  (!%p6072_p11), %s6564_s2, 512, %s6076_s25, [#allocation6], %s5995_s7, %s5995_s7, %s5996_s8  }
  0x3d   : > { %s6137_s23 = sadd.s32 1, %s5991_s15   ;;  %s27_s4 = sadd.s32 1, %s5987_s14 }
  0x3e   : > { %s24_s5 = ssub.s32 %s5991_s15, %s6137_s23  ;;  %p34_p13 = scmp.ne.s32.totalorder %s5987_s14, %s5983_s13 }
  0x3f   : > { %p25_p6 = scmp.eq.s32.totalorder %s24_s5, 0  ;;  %p35_p10 = scmp.eq.s32.totalorder %s5991_s15, 0 }
  0x40   : > { %p6573_p3 = scmp.eq.s32.totalorder %s6042_s16, 1  ;;  %p5793_p7 = scmp.lt.s32.totalorder %s5991_s15, 2 }
  0x41   : > { %s6153_s9 = scalar_select %p25_p6, %s5987_s14, %s27_s4  }
  0x42   : > { %p6147_p5 = por %p6573_p3, %p34_p13  ;;  %p36_p9 = por %p35_p10, %p34_p13 }
  0x43   : > { %s158_s10 = sand.u32 1, %s5987_s14   ;;  %s4801_s25 = sshll.u32 %s5991_s15, 10 }
  0x44   : > { %s6574_s6 = scalar_select %p6147_p5, 1, 0 }
  0x45   : > { %s4767_s11 = sshll.u32 %s158_s10, 6  ;;  %s6160_s24 = scalar_lea.hbm %s6562_s0, %s4801_s25 }
  0x46   : > { %s162_s26 = scalar_lea.vmem [#allocation2], %s4767_s11  ;;  %p6164_p11 = pnand %p5793_p7, %p36_p9 }
  0x47   : > { %s170_s27 = sshll.u32 %s162_s26, 4  ;;  %s6168_s22 = scalar_lea.sflag [#allocation3], %s158_s10  ;;  %s6162_s27 = int_to_ptr.vmem [resolvable:$true] %s170_s27 }
  0x48   : > { %s5891_s29 = scalar_lea.hbm %s6160_s24, 1024  ;;  %p5893_p0 = pneg %p6164_p11 }
  0x49   : > { %p5892_p12 = scmp.ne.s32.totalorder %s6160_s24, %s5891_s29  ;;  %s5896_s5 = scalar_lea.hbm %s6562_s0, 2048 }
  0x4a   : > { %p5897_p13 = scmp.lt.u32.totalorder %s6160_s24, %s6562_s0  ;;  %p5898_p6 = scmp.lt.u32.totalorder %s5896_s5, %s5891_s29 }
  0x4b   : > { %p5894_p1 = pnand %p5893_p0, %p5892_p12  ;;  %p5900_p3 = scmp.lt.u32.totalorder %s5891_s29, %s6160_s24 }
  0x4c   : > { %p5899_p10 = por %p5898_p6, %p5897_p13 }
  0x4d   : > { %p5895_p2 = pneg %p5894_p1 }
  0x4e   : > { %p5901_p7 = por %p5900_p3, %p5899_p10 }
  0x50   : > { %p5902_p9 = pnand %p5901_p7, %p5895_p2 }
  0x52   : > { %5905 = shalt.err (!%p5902_p9)
}
  0x53   : > { %s5906_s10 = scalar_lea.vmem %s6162_s27, 1024  ;;  %s5997_s17 = smov [#allocation2]  }
  0x54   : > { %p5907_p12 = scmp.ne.s32.totalorder %s6162_s27, %s5906_s10  ;;  %s5911_s21 = sshll.u32 %s5997_s17, 4  ;;  %s5912_s21 = int_to_ptr.vmem [resolvable:$false] %s5911_s21 }
  0x55   : > { %s5913_s26 = scalar_lea.vmem %s5912_s21, 2048  ;;  %p5914_p4 = scmp.lt.s32.totalorder %s6162_s27, %s5912_s21 }
  0x56   : > { %p5909_p1 = pnand %p5907_p12, %p5893_p0  ;;  %p5915_p13 = scmp.lt.s32.totalorder %s5913_s26, %s5906_s10 }
  0x58   : > { %p5910_p5 = pneg %p5909_p1  ;;  %p5916_p6 = por %p5915_p13, %p5914_p4 }
  0x5a   : > { %p5917_p10 = pnand %p5916_p6, %p5910_p5 }
  0x5c   : > { %5920 = shalt.err (!%p5917_p10)
}
  0x5d   : > { %5786 = dma.hbm_to_vmem [thread:$0]  (!%p6164_p11), %s6160_s24, 1024, %s6162_s27, %s6168_s22, %s5995_s7, %s5995_s7, %s5996_s8  }
  0x5e   : > { %182 = sbr.rel (%p6061_p8) target bundleno = 985 (0x3d9), region = 32  ;;  %s6202_s29 = sand.u32 (!%p6061_p8), 1, %s5983_s13  }
  0x5f   : > { %s4772_s30 = sshll.u32 (!%p6061_p8), %s6202_s29, 6  ;;  %s185_s4 = scalar_lea.sflag (!%p6061_p8), [#allocation3], %s6202_s29 }
  0x60   : > { %s6206_s5 = scalar_lea.vmem (!%p6061_p8), [#allocation2], %s4772_s30  ;;  %p6576_p4 = scmp.ne.s32.totalorder (!%p6061_p8), %s6569_s18, 0 }
  0x65   : > { %5966 = dma.done.wait (%p6576_p4), %s185_s4, 1024  }
  0x66   : > { %5968 = vsyncadd (%p6576_p4), %s185_s4, 4294966272  ;;  %p6577_p5 = scmp.eq.s32.totalorder %s6042_s16, 0 }
  0x68   : > { %5970 = dma.done.wait (%p6577_p5), [#allocation6], 768   ;;  %p6578_p8 = pmov %p6577_p5 }
  0x69   : > { %vm229_vm0 = vcmask 130048   ;;  %v221_v0 = vld [vmem:[#allocation5] sm:$0xff]  ;;  %v222_v1 = vld [vmem:[#allocation5 + $0x8] sm:$0xff]  ;;  %v4776_v30 = vld [vmem:[%s6206_s5 + $0x10] sm:$0xff]  ;;  %s4775_s18 = sshll.u32 %s6202_s29, 7  ;;  %vm1338_vm1 = vcmask 261120  }
  0x6a   : > { %5972 = vsyncadd (%p6578_p8), [#allocation6], 4294966528  ;;  %v227_v2 = vld [vmem:[%s6206_s5] sm:$0xff]  ;;  %v237_v3 = vand.u32 4294901760, %v221_v0  ;;  %v240_v4 = vand.u32 4294901760, %v222_v1  ;;  %v228_v6 = vld [vmem:[%s6206_s5 + $0x8] sm:$0xff] }
  0x6b   : > { %v231_v5 = vsel %vm229_vm0, %v227_v2, 0  ;;  %v234_v8 = vsel %vm229_vm0, %v228_v6, 0  ;;  %v1347_v31 = vsel %vm229_vm0, %v4776_v30, 0  ;;  %v4777_v32 = vld [vmem:[%s6206_s5 + $0x18] sm:$0xff]  ;;  %v223_v44 = vld [vmem:[#allocation7] sm:$0xff]  ;;  %v225_v52 = vld [vmem:[#allocation7 + $0x10] sm:$0xff] }
  0x6c   : > { %v303_v7 = vand.u32 4294901760, %v231_v5  ;;  %v6220_v9 = vpack.c.bf16 %v240_v4, %v237_v3  ;;  %v313_v10 = vand.u32 4294901760, %v234_v8  ;;  %v325_v11 = vsub.f32 %v221_v0, %v237_v3  ;;  %v224_v51 = vld [vmem:[#allocation7 + $0x8] sm:$0xff]  ;;  %v226_v55 = vld [vmem:[#allocation7 + $0x18] sm:$0xff]  ;;  %s6415_s20 = scalar_lea.vmem [#allocation8], %s4775_s18  ;;  %s4803_s7 = sshll.u32 %s6042_s16, 11 }
  0x6d   : > { %v332_v12 = vsub.f32 %v222_v1, %v240_v4  ;;  %v1419_v33 = vand.u32 4294901760, %v1347_v31  ;;  %v1350_v34 = vsel %vm229_vm0, %v4777_v32, 0  ;;  %v739_v45 = vsel %vm229_vm0, %v223_v44, 0  ;;  %v4789_v44 = vld [vmem:[%s6206_s5 + $0x38] sm:$0xff]  ;;  %s4670_s8 = sshll.u32 %s6415_s20, 4  ;;  %s6512_s28 = scalar_lea.hbm %s6565_s3, %s4803_s7  ;;  %s6514_s8 = int_to_ptr.vmem [resolvable:$true] %s4670_s8 }
  0x6e   : > { %v304_v13 = vsub.f32 %v231_v5, %v303_v7  ;;  %5453 = vmatprep.subr.bf16.mxu0 %v6220_v9  ;;  %v314_v14 = vsub.f32 %v234_v8, %v313_v10  ;;  %v326_v15 = vand.u32 4294901760, %v325_v11  ;;  %v1429_v35 = vand.u32 4294901760, %v1350_v34  ;;  %s4656_s16 = scalar_lea.sflag [#allocation4], %s6202_s29  ;;  %s5921_s22 = scalar_lea.vmem %s6514_s8, 2048 }
  0x6f   : > { %v333_v16 = vand.u32 4294901760, %v332_v12  ;;  %5455 = vmatpush3.bf16.msra.mxu0 %v6220_v9  ;;  %v6226_v28 = vpack.c.bf16 %v332_v12, %v325_v11  ;;  %v1420_v36 = vsub.f32 %v1347_v31, %v1419_v33  ;;  %v6257_v46 = vand.u32 4294901760, %v739_v45  ;;  %p5922_p11 = scmp.ne.s32.totalorder %s6514_s8, %s5921_s22  ;;  %p6579_p0 = scmp.ne.s32.totalorder %s6574_s6, 0 }
  0x70   : > { %v305_v17 = vand.u32 4294901760, %v304_v13  ;;  %v315_v18 = vand.u32 4294901760, %v314_v14  ;;  %v327_v19 = vsub.f32 %v325_v11, %v326_v15  ;;  %v1430_v37 = vsub.f32 %v1350_v34, %v1429_v35  ;;  %s5998_s11 = smov [#allocation8]  }
  0x71   : > { %v334_v20 = vsub.f32 %v332_v12, %v333_v16  ;;  %v6233_v29 = vpack.c.bf16 %v333_v16, %v326_v15  ;;  %v1421_v38 = vand.u32 4294901760, %v1420_v36  ;;  %v6260_v47 = vsub.f32 %v739_v45, %v6257_v46  ;;  %v4782_v45 = vld [vmem:[%s6206_s5 + $0x20] sm:$0xff]  ;;  %p5923_p2 = pnand %p5922_p11, %p6579_p0  ;;  %s5925_s25 = sshll.u32 %s5998_s11, 4  ;;  %s5926_s25 = int_to_ptr.vmem [resolvable:$false] %s5925_s25 }
  0x72   : > { %v306_v21 = vsub.f32 %v304_v13, %v305_v17  ;;  %v316_v22 = vsub.f32 %v314_v14, %v315_v18  ;;  %v328_v23 = vand.u32 4294901760, %v327_v19  ;;  %v1431_v39 = vand.u32 4294901760, %v1430_v37  ;;  %s5927_s10 = scalar_lea.vmem %s5926_s25, 4096  ;;  %p5928_p7 = scmp.lt.s32.totalorder %s6514_s8, %s5926_s25 }
  0x73   : > { %v335_v24 = vand.u32 4294901760, %v334_v20  ;;  %v1422_v40 = vsub.f32 %v1420_v36, %v1421_v38  ;;  %v6263_v48 = vand.u32 4294901760, %v6260_v47  ;;  %v742_v53 = vsel %vm229_vm0, %v224_v51, 0  ;;  %p5924_p3 = pneg %p5923_p2  ;;  %p5929_p9 = scmp.lt.s32.totalorder %s5927_s10, %s5921_s22 }
  0x74   : > { %v307_v25 = vand.u32 4294901760, %v306_v21  ;;  %v317_v26 = vand.u32 4294901760, %v316_v22  ;;  %v1432_v41 = vsub.f32 %v1430_v37, %v1431_v39  ;;  %v745_v54 = vsel %vm229_vm0, %v225_v52, 0 }
  0x75   : > { %v6224_v27 = vpack.c.bf16 %v335_v24, %v328_v23  ;;  %v1423_v42 = vand.u32 4294901760, %v1422_v40  ;;  %v820_v49 = vsub.f32 %v6260_v47, %v6263_v48  ;;  %v6273_v56 = vand.u32 4294901760, %v742_v53  ;;  %p5930_p12 = por %p5929_p9, %p5928_p7 }
  0x76   : > { %5048 = vmatprep.mubr.f32.mxu0 %v307_v25  ;;  %v1433_v43 = vand.u32 4294901760, %v1432_v41  ;;  %v6275_v57 = vand.u32 4294901760, %v745_v54  ;;  %v748_v58 = vsel %vm229_vm0, %v226_v55, 0  ;;  %v4783_v55 = vld [vmem:[%s6206_s5 + $0x28] sm:$0xff] }
  0x77   : > { %5049 = vmatmul.mubr.f32.vlgmr.msra.gmra.mrb[0].mxu0 %v317_v26  ;;  %5457 = vmatprep.subr.bf16.mxu0 %v6224_v27  ;;  %v6268_v50 = vand.u32 4294901760, %v820_v49  ;;  %v6279_v59 = vsub.f32 %v742_v53, %v6273_v56  ;;  %v6281_v60 = vand.u32 4294901760, %v748_v58  ;;  %v3558_v53 = vsel %vm229_vm0, %v4789_v44, 0  ;;  %p5931_p1 = pnand %p5930_p12, %p5924_p3 }
  0x78   : > { %5459 = vmatpush3.bf16.msra.mxu0 %v6224_v27  ;;  %5055 = vmatprep.mubr.f32.mxu0 %v303_v7  ;;  %v6284_v61 = vsub.f32 %v745_v54, %v6275_v57  ;;  %v2451_v54 = vsel %vm229_vm0, %v4782_v45, 0 }
  0x79   : > { %5461 = vmatprep.subr.bf16.mxu0 %v6226_v28  ;;  %5090 = vmatprep.mubr.f32.mxu1 %v6268_v50  ;;  %v6287_v62 = vand.u32 4294901760, %v6279_v59  ;;  %v6290_v63 = vsub.f32 %v748_v58, %v6281_v60  ;;  %v6347_v58 = vand.u32 4294901760, %v3558_v53 }
  0x7a   : > { %v6293_v0 = vand.u32 4294901760, %v6284_v61 }
  0x7b   : > { %v830_v5 = vsub.f32 %v6279_v59, %v6287_v62  ;;  %v6298_v6 = vand.u32 4294901760, %v6290_v63 }
  0x7c   : > { %v840_v8 = vsub.f32 %v6284_v61, %v6293_v0 }
  0x7d   : > { %v850_v15 = vsub.f32 %v6290_v63, %v6298_v6 }
  0x7f   : > { %5056 = vmatmul.mubr.f32.vlgmr.msra.gmra.mrb[0].mxu0 %v313_v10  ;;  %v6309_v22 = vand.u32 4294901760, %v850_v15 }
  0x80   : > { %5463 = vmatpush3.bf16.msra.mxu0 %v6226_v28  ;;  %5062 = vmatprep.mubr.f32.mxu0 %v304_v13 }
  0x81   : > { %5465 = vmatprep.subr.bf16.mxu0 %v6220_v9 }
  0x87   : > { %5063 = vmatmul.mubr.f32.vlgmr.msra.gmra.mrb[0].mxu0 %v314_v14  ;;  %v6302_v14 = vand.u32 4294901760, %v830_v5  ;;  %v3638_v5 = vsub.f32 %v3558_v53, %v6347_v58 }
  0x88   : > { %5467 = vmatpush3.bf16.msra.mxu0 %v6220_v9  ;;  %5069 = vmatprep.mubr.f32.mxu0 %v305_v17 }
  0x89   : > { %5469 = vmatprep.subr.bf16.mxu0 %v6233_v29 }
  0x8f   : > { %5070 = vmatmul.mubr.f32.vlgmr.msra.gmra.mrb[0].mxu0 %v315_v18  ;;  %v6306_v18 = vand.u32 4294901760, %v840_v8 }
  0x90   : > { %5471 = vmatpush3.bf16.msra.mxu0 %v6233_v29  ;;  %5076 = vmatprep.mubr.f32.mxu0 %v303_v7 }
  0x91   : > { %5473 = vmatprep.subr.bf16.mxu0 %v6220_v9 }
  0x97   : > { %5077 = vmatmul.mubr.f32.vlgmr.msra.gmra.mrb[0].mxu0 %v313_v10 }
  0x98   : > { %5475 = vmatpush3.bf16.msra.mxu0 %v6220_v9  ;;  %5083 = vmatprep.mubr.f32.mxu0 %v303_v7 }
  0x99   : > { %5501 = vmatprep.subr.bf16.mxu0 %v6220_v9 }
  0x9f   : > { %5084 = vmatmul.mubr.f32.vlgmr.msra.gmra.mrb[0].mxu0 %v313_v10 }
  0xa0   : > { %5503 = vmatpush3.bf16.msra.mxu0 %v6220_v9  ;;  %5150 = vmatprep.mubr.f32.mxu0 %v1423_v42 }
  0xa1   : > { %5505 = vmatprep.subr.bf16.mxu0 %v6224_v27 }
  0xa3   : > { %5151 = vmatmul.mubr.f32.vlgmr.msra.gmra.mrb[2].mxu0 %v1433_v43 }
  0xa4   : > { %5507 = vmatpush3.bf16.msra.mxu0 %v6224_v27  ;;  %5157 = vmatprep.mubr.f32.mxu0 %v1419_v33 }
  0xa5   : > { %5509 = vmatprep.subr.bf16.mxu0 %v6226_v28 }
  0xab   : > { %5158 = vmatmul.mubr.f32.vlgmr.msra.gmra.mrb[2].mxu0 %v1429_v35 }
  0xac   : > { %5511 = vmatpush3.bf16.msra.mxu0 %v6226_v28  ;;  %5164 = vmatprep.mubr.f32.mxu0 %v1420_v36 }
  0xad   : > { %5513 = vmatprep.subr.bf16.mxu0 %v6220_v9 }
  0xb3   : > { %5165 = vmatmul.mubr.f32.vlgmr.msra.gmra.mrb[2].mxu0 %v1430_v37 }
  0xb4   : > { %5515 = vmatpush3.bf16.msra.mxu0 %v6220_v9  ;;  %5171 = vmatprep.mubr.f32.mxu0 %v1421_v38  ;;  %v4788_v38 = vld [vmem:[%s6206_s5 + $0x30] sm:$0xff] }
  0xb5   : > { %5517 = vmatprep.subr.bf16.mxu0 %v6233_v29  ;;  %v3555_v43 = vsel %vm229_vm0, %v4788_v38, 0 }
  0xb6   : > { %v6340_v52 = vand.u32 4294901760, %v3555_v43 }
  0xbb   : > { %5172 = vmatmul.mubr.f32.vlgmr.msra.gmra.mrb[2].mxu0 %v1431_v39 }
  0xbc   : > { %5519 = vmatpush3.bf16.msra.mxu0 %v6233_v29  ;;  %5178 = vmatprep.mubr.f32.mxu0 %v1419_v33 }
  0xbd   : > { %5521 = vmatprep.subr.bf16.mxu0 %v6220_v9 }
  0xc3   : > { %5179 = vmatmul.mubr.f32.vlgmr.msra.gmra.mrb[2].mxu0 %v1429_v35 }
  0xc4   : > { %5523 = vmatpush3.bf16.msra.mxu0 %v6220_v9  ;;  %5185 = vmatprep.mubr.f32.mxu0 %v1419_v33 }
  0xcb   : > { %5186 = vmatmul.mubr.f32.vlgmr.msra.gmra.mrb[2].mxu0 %v1429_v35 }
  0xcc   : > { %5222 = vmatprep.mubr.f32.mxu0 %v6263_v48 }
 0x172   : > { %v5085_v1 = vpop.f32.mrb[0].mxu0 }
 0x173   : > { %v754_v2 = vand.u32 4294901760, %v5085_v1  ;;  %v728_v3 = vpop.f32.mrb[1].mxu0 }
 0x174   : > { %v751_v4 = vand.u32 4294901760, %v728_v3 }
 0x175   : > { %v866_v7 = vsub.f32 %v5085_v1, %v754_v2  ;;  %v6349_v1 = vand.u32 4294901760, %v2451_v54 }
 0x176   : > { %v5476_v10 = vpack.c.bf16 %v754_v2, %v751_v4  ;;  %v859_v11 = vsub.f32 %v728_v3, %v751_v4  ;;  %v2454_v2 = vsel %vm229_vm0, %v4783_v55, 0  ;;  %v3628_v3 = vsub.f32 %v3555_v43, %v6340_v52 }
 0x177   : > { %v867_v12 = vand.u32 4294901760, %v866_v7  ;;  %v6356_v4 = vand.u32 4294901760, %v2454_v2 }
 0x178   : > { %v860_v13 = vand.u32 4294901760, %v859_v11  ;;  %5477 = vmatprep.subr.bf16.mxu1 %v5476_v10  ;;  %v5484_v16 = vpack.c.bf16 %v866_v7, %v859_v11  ;;  %v3629_v8 = vand.u32 4294901760, %v3628_v3 }
 0x179   : > { %v868_v17 = vsub.f32 %v866_v7, %v867_v12  ;;  %5479 = vmatpush3.bf16.msra.mxu1 %v5476_v10  ;;  %v2524_v7 = vsub.f32 %v2451_v54, %v6349_v1 }
 0x17a   : > { %v861_v19 = vsub.f32 %v859_v11, %v860_v13  ;;  %v5492_v20 = vpack.c.bf16 %v867_v12, %v860_v13  ;;  %v3639_v11 = vand.u32 4294901760, %v3638_v5  ;;  %v3630_v13 = vsub.f32 %v3628_v3, %v3629_v8 }
 0x17b   : > { %v869_v21 = vand.u32 4294901760, %v868_v17  ;;  %v2525_v12 = vand.u32 4294901760, %v2524_v7 }
 0x17c   : > { %5091 = vmatmul.mubr.f32.vlgmr.msra.gmra.mrb[0].mxu1 %v6302_v14  ;;  %v862_v23 = vand.u32 4294901760, %v861_v19  ;;  %v3631_v19 = vand.u32 4294901760, %v3630_v13 }
 0x17d   : > { %5093 = vmatprep.mubr.f32.mxu1 %v6306_v18  ;;  %v2526_v17 = vsub.f32 %v2524_v7, %v2525_v12 }
 0x17e   : > { %v5480_v24 = vpack.c.bf16 %v869_v21, %v862_v23 }
 0x17f   : > { %v2527_v23 = vand.u32 4294901760, %v2526_v17 }
 0x180   : > { %5094 = vmatmul.mubr.f32.gmra.mrb[2].mxu1 %v6309_v22  ;;  %5481 = vmatprep.subr.bf16.mxu1 %v5480_v24 }
 0x181   : > { %5483 = vmatpush3.bf16.msra.mxu1 %v5480_v24  ;;  %5100 = vmatprep.mubr.f32.mxu1 %v6257_v46 }
 0x182   : > { %5485 = vmatprep.subr.bf16.mxu1 %v5484_v16 }
 0x184   : > { %5101 = vmatmul.mubr.f32.vlgmr.msra.gmra.mrb[0].mxu1 %v6273_v56 }
 0x185   : > { %5487 = vmatpush3.bf16.msra.mxu1 %v5484_v16  ;;  %5103 = vmatprep.mubr.f32.mxu1 %v6275_v57  ;;  %v3640_v16 = vsub.f32 %v3638_v5, %v3639_v11 }
 0x186   : > { %5489 = vmatprep.subr.bf16.mxu1 %v5476_v10 }
 0x187   : > { %v3641_v21 = vand.u32 4294901760, %v3640_v16 }
 0x188   : > { %5104 = vmatmul.mubr.f32.gmra.mrb[2].mxu1 %v6281_v60 }
 0x189   : > { %5110 = vmatprep.mubr.f32.mxu1 %v6260_v47 }
 0x18c   : > { %5111 = vmatmul.mubr.f32.vlgmr.msra.gmra.mrb[0].mxu1 %v6279_v59 }
 0x18d   : > { %5491 = vmatpush3.bf16.msra.mxu1 %v5476_v10  ;;  %5113 = vmatprep.mubr.f32.mxu1 %v6284_v61 }
 0x18e   : > { %5493 = vmatprep.subr.bf16.mxu1 %v5492_v20 }
 0x190   : > { %5114 = vmatmul.mubr.f32.gmra.mrb[2].mxu1 %v6290_v63 }
 0x191   : > { %5120 = vmatprep.mubr.f32.mxu1 %v6263_v48 }
 0x194   : > { %5121 = vmatmul.mubr.f32.vlgmr.msra.gmra.mrb[0].mxu1 %v6287_v62 }
 0x195   : > { %5495 = vmatpush3.bf16.msra.mxu1 %v5492_v20  ;;  %5123 = vmatprep.mubr.f32.mxu1 %v6293_v0 }
 0x196   : > { %5497 = vmatprep.subr.bf16.mxu1 %v5476_v10 }
 0x198   : > { %5124 = vmatmul.mubr.f32.gmra.mrb[2].mxu1 %v6298_v6 }
 0x199   : > { %5130 = vmatprep.mubr.f32.mxu1 %v6257_v46 }
 0x19c   : > { %5131 = vmatmul.mubr.f32.vlgmr.msra.gmra.mrb[0].mxu1 %v6273_v56 }
 0x19d   : > { %5499 = vmatpush3.bf16.msra.mxu1 %v5476_v10  ;;  %5133 = vmatprep.mubr.f32.mxu1 %v6275_v57  ;;  %v2534_v10 = vsub.f32 %v2454_v2, %v6356_v4 }
 0x19e   : > { %v5187_v25 = vpop.f32.mrb[2].mxu0 }
 0x19f   : > { %v1858_v26 = vand.u32 4294901760, %v5187_v25  ;;  %v1844_v30 = vpop.f32.mrb[3].mxu0  ;;  %v2535_v15 = vand.u32 4294901760, %v2534_v10 }
 0x1a0   : > { %v1855_v31 = vand.u32 4294901760, %v1844_v30  ;;  %5134 = vmatmul.mubr.f32.gmra.mrb[2].mxu1 %v6281_v60 }
 0x1a1   : > { %v1970_v32 = vsub.f32 %v5187_v25, %v1858_v26  ;;  %5140 = vmatprep.mubr.f32.mxu1 %v6257_v46  ;;  %v2536_v20 = vsub.f32 %v2534_v10, %v2535_v15 }
 0x1a2   : > { %v5524_v33 = vpack.c.bf16 %v1858_v26, %v1855_v31  ;;  %v1963_v34 = vsub.f32 %v1844_v30, %v1855_v31 }
 0x1a3   : > { %v1971_v35 = vand.u32 4294901760, %v1970_v32  ;;  %v2537_v24 = vand.u32 4294901760, %v2536_v20 }
 0x1a4   : > { %5141 = vmatmul.mubr.f32.vlgmr.msra.gmra.mrb[0].mxu1 %v6273_v56  ;;  %5525 = vmatprep.subr.bf16.mxu1 %v5524_v33  ;;  %v1964_v36 = vand.u32 4294901760, %v1963_v34  ;;  %v5532_v37 = vpack.c.bf16 %v1970_v32, %v1963_v34 }
 0x1a5   : > { %5537 = vmatprep.subr.bf16.mxu0 %v5524_v33  ;;  %5527 = vmatpush3.bf16.msra.mxu1 %v5524_v33  ;;  %v1972_v39 = vsub.f32 %v1970_v32, %v1971_v35 }
 0x1a6   : > { %5539 = vmatpush3.bf16.msra.mxu0 %v5524_v33  ;;  %5143 = vmatprep.mubr.f32.mxu1 %v6275_v57  ;;  %v5540_v40 = vpack.c.bf16 %v1971_v35, %v1964_v36  ;;  %v1965_v41 = vsub.f32 %v1963_v34, %v1964_v36 }
 0x1a7   : > { %v1973_v42 = vand.u32 4294901760, %v1972_v39 }
 0x1a8   : > { %5144 = vmatmul.mubr.f32.gmra.mrb[2].mxu1 %v6281_v60  ;;  %5541 = vmatprep.subr.bf16.mxu0 %v5540_v40  ;;  %v1966_v49 = vand.u32 4294901760, %v1965_v41 }
 0x1a9   : > { %5223 = vmatmul.mubr.f32.vlgmr.msra.gmra.mrb[4].mxu0 %v6287_v62  ;;  %5192 = vmatprep.mubr.f32.mxu1 %v6268_v50 }
 0x1aa   : > { %5543 = vmatpush3.bf16.msra.mxu0 %v5540_v40  ;;  %5225 = vmatprep.mubr.f32.mxu0 %v6293_v0  ;;  %v5528_v51 = vpack.c.bf16 %v1973_v42, %v1966_v49 }
 0x1ab   : > { %5545 = vmatprep.subr.bf16.mxu0 %v5524_v33 }
 0x1ac   : > { %5193 = vmatmul.mubr.f32.vlgmr.msra.gmra.mrb[4].mxu1 %v6302_v14  ;;  %5529 = vmatprep.subr.bf16.mxu1 %v5528_v51 }
 0x1ad   : > { %5226 = vmatmul.mubr.f32.gmra.mrb[6].mxu0 %v6298_v6  ;;  %5531 = vmatpush3.bf16.msra.mxu1 %v5528_v51 }
 0x1ae   : > { %5533 = vmatprep.subr.bf16.mxu1 %v5532_v37  ;;  %5195 = vmatprep.mubr.f32.mxu1 %v6306_v18 }
 0x1af   : > { %5232 = vmatprep.mubr.f32.mxu0 %v6257_v46 }
 0x1b0   : > { %5196 = vmatmul.mubr.f32.gmra.mrb[6].mxu1 %v6309_v22 }
 0x1b1   : > { %5233 = vmatmul.mubr.f32.vlgmr.msra.gmra.mrb[4].mxu0 %v6273_v56  ;;  %5202 = vmatprep.mubr.f32.mxu1 %v6257_v46 }
 0x1b2   : > { %5547 = vmatpush3.bf16.msra.mxu0 %v5524_v33  ;;  %5235 = vmatprep.mubr.f32.mxu0 %v6275_v57 }
 0x1b3   : > { %5597 = vmatprep.subr.bf16.mxu0 %v6220_v9 }
 0x1b4   : > { %5203 = vmatmul.mubr.f32.vlgmr.msra.gmra.mrb[4].mxu1 %v6273_v56 }
 0x1b5   : > { %5535 = vmatpush3.bf16.msra.mxu1 %v5532_v37  ;;  %5236 = vmatmul.mubr.f32.gmra.mrb[6].mxu0 %v6281_v60 }
 0x1b6   : > { %5205 = vmatprep.mubr.f32.mxu1 %v6275_v57  ;;  %5242 = vmatprep.mubr.f32.mxu0 %v6257_v46 }
 0x1b7   : > { %5549 = vmatprep.subr.bf16.mxu1 %v6220_v9 }
 0x1b8   : > { %5206 = vmatmul.mubr.f32.gmra.mrb[6].mxu1 %v6281_v60 }
 0x1b9   : > { %5243 = vmatmul.mubr.f32.vlgmr.msra.gmra.mrb[4].mxu0 %v6273_v56  ;;  %5212 = vmatprep.mubr.f32.mxu1 %v6260_v47 }
 0x1ba   : > { %5245 = vmatprep.mubr.f32.mxu0 %v6275_v57  ;;  %5599 = vmatpush3.bf16.msra.mxu0 %v6220_v9 }
 0x1bb   : > { %5601 = vmatprep.subr.bf16.mxu0 %v6224_v27 }
 0x1bc   : > { %5213 = vmatmul.mubr.f32.vlgmr.msra.gmra.mrb[4].mxu1 %v6279_v59 }
 0x1bd   : > { %5246 = vmatmul.mubr.f32.gmra.mrb[6].mxu0 %v6281_v60  ;;  %5215 = vmatprep.mubr.f32.mxu1 %v6284_v61 }
 0x1be   : > { %5354 = vmatprep.mubr.f32.mxu0 %v3631_v19  ;;  %5551 = vmatpush3.bf16.msra.mxu1 %v6220_v9 }
 0x1bf   : > { %5553 = vmatprep.subr.bf16.mxu1 %v6224_v27 }
 0x1c0   : > { %5216 = vmatmul.mubr.f32.gmra.mrb[6].mxu1 %v6290_v63 }
 0x1c1   : > { %5355 = vmatmul.mubr.f32.vlgmr.msra.gmra.mrb[8].mxu0 %v3641_v21  ;;  %5252 = vmatprep.mubr.f32.mxu1 %v2527_v23 }
 0x1c2   : > { %5603 = vmatpush3.bf16.msra.mxu0 %v6224_v27  ;;  %5361 = vmatprep.mubr.f32.mxu0 %v6340_v52 }
 0x1c3   : > { %5605 = vmatprep.subr.bf16.mxu0 %v6226_v28 }
 0x1c4   : > { %5253 = vmatmul.mubr.f32.vlgmr.msra.gmra.mrb[8].mxu1 %v2537_v24 }
 0x1c5   : > { %5555 = vmatpush3.bf16.msra.mxu1 %v6224_v27  ;;  %5259 = vmatprep.mubr.f32.mxu1 %v6349_v1 }
 0x1c6   : > { %5557 = vmatprep.subr.bf16.mxu1 %v6226_v28 }
 0x1c9   : > { %5362 = vmatmul.mubr.f32.vlgmr.msra.gmra.mrb[8].mxu0 %v6347_v58 }
 0x1ca   : > { %5607 = vmatpush3.bf16.msra.mxu0 %v6226_v28  ;;  %5368 = vmatprep.mubr.f32.mxu0 %v3628_v3 }
 0x1cb   : > { %5609 = vmatprep.subr.bf16.mxu0 %v6220_v9 }
 0x1cc   : > { %5260 = vmatmul.mubr.f32.vlgmr.msra.gmra.mrb[8].mxu1 %v6356_v4 }
 0x1cd   : > { %5559 = vmatpush3.bf16.msra.mxu1 %v6226_v28  ;;  %5266 = vmatprep.mubr.f32.mxu1 %v2524_v7 }
 0x1ce   : > { %5561 = vmatprep.subr.bf16.mxu1 %v6220_v9 }
 0x1d1   : > { %5369 = vmatmul.mubr.f32.vlgmr.msra.gmra.mrb[8].mxu0 %v3638_v5 }
 0x1d2   : > { %5611 = vmatpush3.bf16.msra.mxu0 %v6220_v9  ;;  %5375 = vmatprep.mubr.f32.mxu0 %v3629_v8 }
 0x1d3   : > { %5613 = vmatprep.subr.bf16.mxu0 %v6233_v29 }
 0x1d4   : > { %5267 = vmatmul.mubr.f32.vlgmr.msra.gmra.mrb[8].mxu1 %v2534_v10 }
 0x1d5   : > { %5563 = vmatpush3.bf16.msra.mxu1 %v6220_v9  ;;  %5273 = vmatprep.mubr.f32.mxu1 %v2525_v12 }
 0x1d6   : > { %5565 = vmatprep.subr.bf16.mxu1 %v6233_v29 }
 0x1d9   : > { %5376 = vmatmul.mubr.f32.vlgmr.msra.gmra.mrb[8].mxu0 %v3639_v11 }
 0x1da   : > { %5615 = vmatpush3.bf16.msra.mxu0 %v6233_v29  ;;  %5382 = vmatprep.mubr.f32.mxu0 %v6340_v52 }
 0x1db   : > { %5617 = vmatprep.subr.bf16.mxu0 %v6220_v9 }
 0x1dc   : > { %5274 = vmatmul.mubr.f32.vlgmr.msra.gmra.mrb[8].mxu1 %v2535_v15 }
 0x1dd   : > { %5567 = vmatpush3.bf16.msra.mxu1 %v6233_v29  ;;  %5280 = vmatprep.mubr.f32.mxu1 %v6349_v1 }
 0x1de   : > { %5569 = vmatprep.subr.bf16.mxu1 %v6220_v9 }
 0x1e1   : > { %5383 = vmatmul.mubr.f32.vlgmr.msra.gmra.mrb[8].mxu0 %v6347_v58 }
 0x1e2   : > { %5619 = vmatpush3.bf16.msra.mxu0 %v6220_v9  ;;  %5389 = vmatprep.mubr.f32.mxu0 %v6340_v52 }
 0x1e4   : > { %5281 = vmatmul.mubr.f32.vlgmr.msra.gmra.mrb[8].mxu1 %v6356_v4 }
 0x1e5   : > { %5571 = vmatpush3.bf16.msra.mxu1 %v6220_v9  ;;  %5287 = vmatprep.mubr.f32.mxu1 %v6349_v1 }
 0x1e9   : > { %5390 = vmatmul.mubr.f32.vlgmr.msra.gmra.mrb[8].mxu0 %v6347_v58 }
 0x1ea   : > { %5396 = vmatprep.mubr.f32.mxu0 %v6268_v50 }
 0x1ec   : > { %5288 = vmatmul.mubr.f32.vlgmr.msra.gmra.mrb[8].mxu1 %v6356_v4 }
 0x1ed   : > { %5294 = vmatprep.mubr.f32.mxu1 %v6268_v50 }
 0x277   : > { %v5142_v27 = vpop.f32.mrb[0].mxu1 }
 0x278   : > { %1340 = vst.msk [vmem:[%s6415_s20 + $0x8] sm:$0xff] %vm1338_vm1, %v5142_v27  ;;  %v1316_v9 = vpop.f32.mrb[1].mxu1 }
 0x279   : > { %1339 = vst.msk [vmem:[%s6415_s20] sm:$0xff] %vm1338_vm1, %v1316_v9 }
 0x27b   : > { %v5145_v28 = vpop.f32.mrb[2].mxu1 }
 0x27c   : > { %1342 = vst.msk [vmem:[%s6415_s20 + $0x18] sm:$0xff] %vm1338_vm1, %v5145_v28  ;;  %v1328_v29 = vpop.f32.mrb[3].mxu1 }
 0x27d   : > { %1341 = vst.msk [vmem:[%s6415_s20 + $0x10] sm:$0xff] %vm1338_vm1, %v1328_v29 }
 0x28c   : > { %v5244_v50 = vpop.f32.mrb[4].mxu0 }
 0x28d   : > { %v2420_v25 = vpop.f32.mrb[5].mxu0 }
 0x28f   : > { %v5214_v26 = vpop.f32.mrb[4].mxu1 }
 0x290   : > { %v5644_v30 = vadd.f32 %v5244_v50, %v5214_v26  ;;  %v5247_v31 = vpop.f32.mrb[6].mxu0  ;;  %v2132_v32 = vpop.f32.mrb[5].mxu1 }
 0x291   : > { %v5645_v33 = vadd.f32 %v2420_v25, %v2132_v32  ;;  %v2432_v34 = vpop.f32.mrb[7].mxu0 }
 0x292   : > { %4779 = vst.msk [vmem:[%s6415_s20 + $0x28] sm:$0xff] %vm1338_vm1, %v5644_v30 }
 0x293   : > { %4778 = vst.msk [vmem:[%s6415_s20 + $0x20] sm:$0xff] %vm1338_vm1, %v5645_v33  ;;  %v5217_v35 = vpop.f32.mrb[6].mxu1 }
 0x294   : > { %v5646_v36 = vadd.f32 %v5247_v31, %v5217_v35  ;;  %v2146_v37 = vpop.f32.mrb[7].mxu1 }
 0x295   : > { %v5647_v38 = vadd.f32 %v2432_v34, %v2146_v37 }
 0x296   : > { %4781 = vst.msk [vmem:[%s6415_s20 + $0x38] sm:$0xff] %vm1338_vm1, %v5646_v36 }
 0x297   : > { %4780 = vst.msk [vmem:[%s6415_s20 + $0x30] sm:$0xff] %vm1338_vm1, %v5647_v38 }
 0x2bc   : > { %v5391_v39 = vpop.f32.mrb[8].mxu0 }
 0x2bd   : > { %v4066_v40 = vand.u32 4294901760, %v5391_v39  ;;  %v4052_v41 = vpop.f32.mrb[9].mxu0 }
 0x2be   : > { %v4063_v42 = vand.u32 4294901760, %v4052_v41 }
 0x2bf   : > { %v4178_v43 = vsub.f32 %v5391_v39, %v4066_v40  ;;  %v5289_v44 = vpop.f32.mrb[8].mxu1 }
 0x2c0   : > { %v6433_v45 = vpack.c.bf16 %v4066_v40, %v4063_v42  ;;  %v4171_v49 = vsub.f32 %v4052_v41, %v4063_v42  ;;  %v2962_v51 = vand.u32 4294901760, %v5289_v44  ;;  %v2948_v52 = vpop.f32.mrb[9].mxu1 }
 0x2c1   : > { %v4179_v53 = vand.u32 4294901760, %v4178_v43  ;;  %v2959_v54 = vand.u32 4294901760, %v2948_v52 }
 0x2c2   : > { %v4172_v55 = vand.u32 4294901760, %v4171_v49  ;;  %v3074_v58 = vsub.f32 %v5289_v44, %v2962_v51  ;;  %5621 = vmatprep.subr.bf16.mxu0 %v6433_v45  ;;  %v5628_v1 = vpack.c.bf16 %v4178_v43, %v4171_v49 }
 0x2c3   : > { %v4180_v2 = vsub.f32 %v4178_v43, %v4179_v53  ;;  %v6436_v3 = vpack.c.bf16 %v2962_v51, %v2959_v54  ;;  %v3067_v4 = vsub.f32 %v2948_v52, %v2959_v54  ;;  %5623 = vmatpush3.bf16.msra.mxu0 %v6433_v45 }
 0x2c4   : > { %v4173_v5 = vsub.f32 %v4171_v49, %v4172_v55  ;;  %v3075_v7 = vand.u32 4294901760, %v3074_v58  ;;  %v5636_v8 = vpack.c.bf16 %v4179_v53, %v4172_v55 }
 0x2c5   : > { %v3068_v10 = vand.u32 4294901760, %v3067_v4  ;;  %5573 = vmatprep.subr.bf16.mxu1 %v6436_v3  ;;  %v4181_v11 = vand.u32 4294901760, %v4180_v2  ;;  %v5580_v12 = vpack.c.bf16 %v3074_v58, %v3067_v4 }
 0x2c6   : > { %v3076_v13 = vsub.f32 %v3074_v58, %v3075_v7  ;;  %5397 = vmatmul.mubr.f32.vlgmr.msra.gmra.mrb[10].mxu0 %v6302_v14  ;;  %5575 = vmatpush3.bf16.msra.mxu1 %v6436_v3  ;;  %v4174_v15 = vand.u32 4294901760, %v4173_v5 }
 0x2c7   : > { %v3069_v16 = vsub.f32 %v3067_v4, %v3068_v10  ;;  %5399 = vmatprep.mubr.f32.mxu0 %v6306_v18  ;;  %v5588_v17 = vpack.c.bf16 %v3075_v7, %v3068_v10 }
 0x2c8   : > { %v5624_v19 = vpack.c.bf16 %v4181_v11, %v4174_v15  ;;  %v3077_v20 = vand.u32 4294901760, %v3076_v13 }
 0x2c9   : > { %5295 = vmatmul.mubr.f32.vlgmr.msra.gmra.mrb[10].mxu1 %v6302_v14  ;;  %v3070_v21 = vand.u32 4294901760, %v3069_v16 }
 0x2ca   : > { %5400 = vmatmul.mubr.f32.gmra.mrb[12].mxu0 %v6309_v22  ;;  %5625 = vmatprep.subr.bf16.mxu0 %v5624_v19 }
 0x2cb   : > { %5627 = vmatpush3.bf16.msra.mxu0 %v5624_v19  ;;  %5297 = vmatprep.mubr.f32.mxu1 %v6306_v18  ;;  %v5576_v23 = vpack.c.bf16 %v3077_v20, %v3070_v21 }
 0x2cc   : > { %5629 = vmatprep.subr.bf16.mxu0 %v5628_v1  ;;  %5406 = vmatprep.mubr.f32.mxu0 %v6257_v46 }
 0x2cd   : > { %5298 = vmatmul.mubr.f32.gmra.mrb[12].mxu1 %v6309_v22  ;;  %5577 = vmatprep.subr.bf16.mxu1 %v5576_v23 }
 0x2ce   : > { %5407 = vmatmul.mubr.f32.vlgmr.msra.gmra.mrb[10].mxu0 %v6273_v56  ;;  %5579 = vmatpush3.bf16.msra.mxu1 %v5576_v23 }
 0x2cf   : > { %5631 = vmatpush3.bf16.msra.mxu0 %v5628_v1  ;;  %5581 = vmatprep.subr.bf16.mxu1 %v5580_v12 }
 0x2d0   : > { %5633 = vmatprep.subr.bf16.mxu0 %v6433_v45  ;;  %5304 = vmatprep.mubr.f32.mxu1 %v6257_v46 }
 0x2d1   : > { %5409 = vmatprep.mubr.f32.mxu0 %v6275_v57  ;;  %5305 = vmatmul.mubr.f32.vlgmr.msra.gmra.mrb[10].mxu1 %v6273_v56 }
 0x2d2   : > { %5410 = vmatmul.mubr.f32.gmra.mrb[12].mxu0 %v6281_v60  ;;  %5583 = vmatpush3.bf16.msra.mxu1 %v5580_v12 }
 0x2d3   : > { %5585 = vmatprep.subr.bf16.mxu1 %v6436_v3  ;;  %5307 = vmatprep.mubr.f32.mxu1 %v6275_v57 }
 0x2d4   : > { %5416 = vmatprep.mubr.f32.mxu0 %v6260_v47 }
 0x2d5   : > { %5308 = vmatmul.mubr.f32.gmra.mrb[12].mxu1 %v6281_v60 }
 0x2d6   : > { %5417 = vmatmul.mubr.f32.vlgmr.msra.gmra.mrb[10].mxu0 %v6279_v59  ;;  %5314 = vmatprep.mubr.f32.mxu1 %v6260_v47 }
 0x2d7   : > { %5635 = vmatpush3.bf16.msra.mxu0 %v6433_v45  ;;  %5419 = vmatprep.mubr.f32.mxu0 %v6284_v61 }
 0x2d8   : > { %5637 = vmatprep.subr.bf16.mxu0 %v5636_v8 }
 0x2d9   : > { %5315 = vmatmul.mubr.f32.vlgmr.msra.gmra.mrb[10].mxu1 %v6279_v59 }
 0x2da   : > { %5587 = vmatpush3.bf16.msra.mxu1 %v6436_v3  ;;  %5420 = vmatmul.mubr.f32.gmra.mrb[12].mxu0 %v6290_v63 }
 0x2db   : > { %5589 = vmatprep.subr.bf16.mxu1 %v5588_v17  ;;  %5317 = vmatprep.mubr.f32.mxu1 %v6284_v61 }
 0x2dc   : > { %5426 = vmatprep.mubr.f32.mxu0 %v6263_v48 }
 0x2dd   : > { %5318 = vmatmul.mubr.f32.gmra.mrb[12].mxu1 %v6290_v63 }
 0x2de   : > { %5427 = vmatmul.mubr.f32.vlgmr.msra.gmra.mrb[10].mxu0 %v6287_v62  ;;  %5324 = vmatprep.mubr.f32.mxu1 %v6263_v48 }
 0x2df   : > { %5639 = vmatpush3.bf16.msra.mxu0 %v5636_v8  ;;  %5429 = vmatprep.mubr.f32.mxu0 %v6293_v0 }
 0x2e0   : > { %5641 = vmatprep.subr.bf16.mxu0 %v6433_v45 }
 0x2e1   : > { %5325 = vmatmul.mubr.f32.vlgmr.msra.gmra.mrb[10].mxu1 %v6287_v62 }
 0x2e2   : > { %5591 = vmatpush3.bf16.msra.mxu1 %v5588_v17  ;;  %5430 = vmatmul.mubr.f32.gmra.mrb[12].mxu0 %v6298_v6 }
 0x2e3   : > { %5593 = vmatprep.subr.bf16.mxu1 %v6436_v3  ;;  %5327 = vmatprep.mubr.f32.mxu1 %v6293_v0 }
 0x2e4   : > { %5436 = vmatprep.mubr.f32.mxu0 %v6257_v46 }
 0x2e5   : > { %5328 = vmatmul.mubr.f32.gmra.mrb[12].mxu1 %v6298_v6 }
 0x2e6   : > { %5437 = vmatmul.mubr.f32.vlgmr.msra.gmra.mrb[10].mxu0 %v6273_v56  ;;  %5334 = vmatprep.mubr.f32.mxu1 %v6257_v46 }
 0x2e7   : > { %5643 = vmatpush3.bf16.msra.mxu0 %v6433_v45  ;;  %5439 = vmatprep.mubr.f32.mxu0 %v6275_v57 }
 0x2e9   : > { %5335 = vmatmul.mubr.f32.vlgmr.msra.gmra.mrb[10].mxu1 %v6273_v56 }
 0x2ea   : > { %5595 = vmatpush3.bf16.msra.mxu1 %v6436_v3  ;;  %5440 = vmatmul.mubr.f32.gmra.mrb[12].mxu0 %v6281_v60 }
 0x2eb   : > { %5337 = vmatprep.mubr.f32.mxu1 %v6275_v57  ;;  %5446 = vmatprep.mubr.f32.mxu0 %v6257_v46 }
 0x2ed   : > { %5338 = vmatmul.mubr.f32.gmra.mrb[12].mxu1 %v6281_v60 }
 0x2ee   : > { %5447 = vmatmul.mubr.f32.vlgmr.msra.gmra.mrb[10].mxu0 %v6273_v56  ;;  %5344 = vmatprep.mubr.f32.mxu1 %v6257_v46 }
 0x2ef   : > { %5449 = vmatprep.mubr.f32.mxu0 %v6275_v57 }
 0x2f1   : > { %5345 = vmatmul.mubr.f32.vlgmr.msra.gmra.mrb[10].mxu1 %v6273_v56 }
 0x2f2   : > { %5450 = vmatmul.mubr.f32.gmra.mrb[12].mxu0 %v6281_v60  ;;  %5347 = vmatprep.mubr.f32.mxu1 %v6275_v57 }
 0x2f5   : > { %5348 = vmatmul.mubr.f32.gmra.mrb[12].mxu1 %v6281_v60 }
 0x3c1   : > { %v5448_v47 = vpop.f32.mrb[10].mxu0 }
 0x3c2   : > { %4791 = vst.msk [vmem:[%s6415_s20 + $0x68] sm:$0xff] %vm1338_vm1, %v5448_v47  ;;  %v4628_v48 = vpop.f32.mrb[11].mxu0 }
 0x3c3   : > { %4790 = vst.msk [vmem:[%s6415_s20 + $0x60] sm:$0xff] %vm1338_vm1, %v4628_v48 }
 0x3c4   : > { %v5346_v46 = vpop.f32.mrb[10].mxu1 }
 0x3c5   : > { %4785 = vst.msk [vmem:[%s6415_s20 + $0x48] sm:$0xff] %vm1338_vm1, %v5346_v46  ;;  %v5451_v56 = vpop.f32.mrb[12].mxu0  ;;  %v3524_v59 = vpop.f32.mrb[11].mxu1 }
 0x3c6   : > { %4793 = vst.msk [vmem:[%s6415_s20 + $0x78] sm:$0xff] %vm1338_vm1, %v5451_v56  ;;  %4784 = vst.msk [vmem:[%s6415_s20 + $0x40] sm:$0xff] %vm1338_vm1, %v3524_v59  ;;  %v4640_v57 = vpop.f32.mrb[13].mxu0 }
 0x3c7   : > { %4792 = vst.msk [vmem:[%s6415_s20 + $0x70] sm:$0xff] %vm1338_vm1, %v4640_v57 }
 0x3c8   : > { %v5349_v60 = vpop.f32.mrb[12].mxu1 }
 0x3c9   : > { %4787 = vst.msk [vmem:[%s6415_s20 + $0x58] sm:$0xff] %vm1338_vm1, %v5349_v60  ;;  %v3536_v61 = vpop.f32.mrb[13].mxu1 }
 0x3ca   : > { %4786 = vst.msk [vmem:[%s6415_s20 + $0x50] sm:$0xff] %vm1338_vm1, %v3536_v61 }
 0x3cb   : > { %5934 = shalt.err (!%p5931_p1)
}
 0x3cc   : > { %s5935_s17 = scalar_lea.hbm %s6512_s28, 2048  ;;  %s5939_s30 = scalar_lea.hbm %s6565_s3, 4096 }
 0x3cd   : > { %p5936_p13 = scmp.ne.s32.totalorder %s6512_s28, %s5935_s17  ;;  %p5940_p4 = scmp.lt.u32.totalorder %s6512_s28, %s6565_s3 }
 0x3ce   : > { %p5941_p5 = scmp.lt.u32.totalorder %s5939_s30, %s5935_s17  ;;  %p5943_p11 = scmp.lt.u32.totalorder %s5935_s17, %s6512_s28 }
 0x3cf   : > { %p5937_p6 = pnand %p5936_p13, %p6579_p0 }
 0x3d0   : > { %p5942_p8 = por %p5941_p5, %p5940_p4 }
 0x3d1   : > { %p5938_p10 = pneg %p5937_p6 }
 0x3d2   : > { %p5944_p2 = por %p5943_p11, %p5942_p8 }
 0x3d4   : > { %p5945_p3 = pnand %p5944_p2, %p5938_p10 }
 0x3d6   : > { %5948 = shalt.err (!%p5945_p3)
}
 0x3d7   : > { %s5999_s18 = smov 128   ;;  %s6000_s20 = smov 8  }
 0x3d8   : > { %5774 = dma.vmem_to_hbm [thread:$0]  (%p6579_p0), %s6514_s8, 2048, %s6512_s28, %s4656_s16, %s5999_s18, %s5999_s18, %s6000_s20  }
 0x3d9 PF: > { %s4685_s7 = sand.u32 1, %s5979_s12   ;;  %p6580_p7 = scmp.ne.s32.totalorder %s6570_s19, 0 }
 0x3da   : > { %p6581_p9 = scmp.ge.s32.totalorder %s5991_s15, 2  ;;  %s4686_s24 = scalar_lea.sflag [#allocation4], %s4685_s7 }
 0x3dc   : > { %p5788_p12 = pnand %p6581_p9, %p6580_p7 }
 0x3de   : > { %5974 = dma.done.wait (!%p5788_p12), %s4686_s24, 2048  }
 0x3df   : > { %5976 = vsyncadd (!%p5788_p12), %s4686_s24, 4294965248  ;;  %p17_p1 = scmp.ge.s32.totalorder %s6137_s23, 4   ;;  %s6582_s12 = smov %s5983_s13 }
 0x3e0   : > { %s6583_s13 = smov %s5987_s14  ;;  %s6584_s14 = smov %s6153_s9 }
 0x3e1   : > { %s6585_s15 = smov %s6137_s23  ;;  %19 = sbr.rel (!%p17_p1) target bundleno = 6 (0x6), region = 91 }
 0x3e8   :  { %4691 = vsyncpa [#allocation3], 1 }
 0x3e9   :  { %4693 = vsyncpa [#allocation3 + $0x1], 1 }
 0x3ea   :  { %4694 = vsyncpa [#allocation6], 1 }
 0x3eb   :  { %4695 = vsyncpa [#allocation4], 1 }
 0x3ec   :  { %4697 = vsyncpa [#allocation4 + $0x1], 1 }

</bundles_post_ra>
